<compile_context>
chip_gen: v7x
topology: tpu7x:2x2x1
jax: 0.10.0
libtpu: 0.0.40
codegen_flags: <defaults>
</compile_context>

<pallas_src>
import jax
import jax.numpy as jnp
from jax.experimental import pallas as pl
from jax.experimental.pallas import tpu as pltpu

# ---- small, module-consistent synthetic sizes ----
BATCH = 8
FEATURE_SIZE = 256        # stands in for 512*7*7 = 25088
HIDDEN_SIZE = 128         # stands in for 512
VOCAB = {'<start>': 1, '<end>': 2, 'a': 3, 'man': 4, 'riding': 5,
         'horse': 6, 'on': 7, 'the': 8, 'beach': 9}
VOCAB_SIZE = len(VOCAB) + 1   # 10
V_PAD = 128                   # lane-dense padded vocab width
TK_CAP = 3584                 # max K tile (divides 25088; fits v7x VMEM x2)


# ----------------------------------------------------------------------------
# Kernels
# ----------------------------------------------------------------------------
def _gates_to_logits(gates, w_fc_t_ref, b_fc_ref, out_ref):
    """Gate nonlinearities (zero initial state) + fc matmul, writes out_ref."""
    H = w_fc_t_ref.shape[0]
    # PyTorch gate order: i, f, g, o.  Forget gate skipped: c0 == 0.
    i_g = jax.nn.sigmoid(gates[:, 0 * H:1 * H])
    g_g = jnp.tanh(gates[:, 2 * H:3 * H])
    o_g = jax.nn.sigmoid(gates[:, 3 * H:4 * H])
    c_t = i_g * g_g                                    # f * c0 == 0
    h_t = o_g * jnp.tanh(c_t)                          # (B, H) f32
    out = jnp.dot(h_t.astype(w_fc_t_ref.dtype), w_fc_t_ref[...],
                  preferred_element_type=jnp.float32) + b_fc_ref[...]
    out_ref[...] = out.astype(out_ref.dtype)


def caption_rnn_kernel_single(x_ref, w_ih_t_ref, b_gate_ref, w_fc_t_ref,
                              b_fc_ref, out_ref):
    """Single-tile fused path (whole F fits one VMEM tile): no scratch."""
    gates = jnp.dot(x_ref[...], w_ih_t_ref[...],
                    preferred_element_type=jnp.float32) + b_gate_ref[...]
    _gates_to_logits(gates, w_fc_t_ref, b_fc_ref, out_ref)


def caption_rnn_kernel_streamed(x_ref, w_ih_t_ref, b_gate_ref, w_fc_t_ref,
                                b_fc_ref, out_ref, acc_ref):
    """K-streamed path: weight tiles streamed, (B, 4H) f32 accumulator."""
    k = pl.program_id(0)

    @pl.when(k == 0)
    def _():
        acc_ref[...] = jnp.zeros_like(acc_ref)

    acc_ref[...] += jnp.dot(x_ref[...], w_ih_t_ref[...],
                            preferred_element_type=jnp.float32)

    @pl.when(k == pl.num_programs(0) - 1)
    def _():
        gates = acc_ref[...] + b_gate_ref[...]         # (B, 4H) f32
        _gates_to_logits(gates, w_fc_t_ref, b_fc_ref, out_ref)


# ----------------------------------------------------------------------------
# Wrapper
# ----------------------------------------------------------------------------
def _pick_k_tile(feature_size, cap=TK_CAP):
    """Largest multiple-of-128 divisor of F up to cap (full F if it's small)."""
    if feature_size <= cap:
        return feature_size
    for tk in range(cap - cap % 128, 127, -128):
        if feature_size % tk == 0:
            return tk
    return feature_size   # fallback: single giant tile


def _vmem_limit_bytes(B, tk, H, v_pad):
    """Scoped VMEM budget: double-buffered streamed tiles + resident blocks."""
    db = 2
    est = (db * B * tk * 2                 # x tile (bf16)
           + db * tk * 4 * H * 2           # W_ih^T tile (bf16)
           + db * 4 * H * 4                # fused gate bias (f32)
           + db * H * v_pad * 2            # W_fc^T (bf16, resident)
           + db * v_pad * 4                # b_fc (f32, resident)
           + db * B * v_pad * 4            # output tile (f32)
           + B * 4 * H * 4)                # accumulator scratch (f32)
    return int(min(max(2 * est, 32 << 20), 60 << 20))


def prepare_params(params):
    """One-time parameter prep (bf16 weights, lane-dense padded fc). Do NOT
    call per forward step."""
    w_ih_t, b_gate, w_fc_t, b_fc = params
    H, V = w_fc_t.shape
    v_pad = max(V_PAD, pl.cdiv(V, 128) * 128)
    w_fc_t_p = jnp.zeros((H, v_pad), jnp.bfloat16).at[:, :V].set(
        w_fc_t.astype(jnp.bfloat16))
    b_fc_p = jnp.zeros((1, v_pad), jnp.float32).at[:, :V].set(b_fc)
    return {
        "w_ih_t_bf16": w_ih_t.astype(jnp.bfloat16),    # (F, 4H)
        "b_gate": b_gate.astype(jnp.float32),          # (1, 4H)
        "w_fc_t_pad": w_fc_t_p,                        # (H, v_pad) bf16
        "b_fc_pad": b_fc_p,                            # (1, v_pad) f32
        "vocab_size": V,
    }


def caption_rnn_forward(features, captions, prepped, *, tk=None):
    """Pallas equivalent of CaptionRNN.forward(features, captions)."""
    del captions  # unused by the PyTorch forward pass
    w_ih_t = prepped["w_ih_t_bf16"]
    b_gate = prepped["b_gate"]
    w_fc_t_p = prepped["w_fc_t_pad"]
    b_fc_p = prepped["b_fc_pad"]
    V = prepped["vocab_size"]

    B, F = features.shape
    H, v_pad = w_fc_t_p.shape
    if tk is None:
        tk = _pick_k_tile(F)
    assert F % tk == 0, (F, tk)
    n_k = F // tk

    # Only per-call prep: cheap activation cast.
    x_bf16 = features.astype(jnp.bfloat16)

    cost = pl.CostEstimate(
        flops=2 * B * F * 4 * H + 2 * B * H * v_pad,
        transcendentals=4 * B * H,
        bytes_accessed=(F * 4 * H * 2 + B * F * 2 + H * v_pad * 2
                        + 4 * H * 4 + v_pad * 4 + B * v_pad * 4),
    )
    cparams = pltpu.CompilerParams(
        dimension_semantics=("arbitrary",),
        vmem_limit_bytes=_vmem_limit_bytes(B, tk, H, v_pad),
    )

    in_specs = [
        pl.BlockSpec((B, tk), lambda k: (0, k)),        # x: stream K tiles
        pl.BlockSpec((tk, 4 * H), lambda k: (k, 0)),    # W_ih^T: stream K
        pl.BlockSpec((1, 4 * H), lambda k: (0, 0)),     # fused gate bias
        pl.BlockSpec((H, v_pad), lambda k: (0, 0)),     # W_fc^T (padded)
        pl.BlockSpec((1, v_pad), lambda k: (0, 0)),     # b_fc (padded)
    ]
    out_spec = pl.BlockSpec((B, v_pad), lambda k: (0, 0))
    out_shape = jax.ShapeDtypeStruct((B, v_pad), jnp.float32)

    if n_k == 1:
        # Fused single-pass kernel: no accumulator scratch, no pl.when.
        out_padded = pl.pallas_call(
            caption_rnn_kernel_single,
            out_shape=out_shape,
            grid=(1,),
            in_specs=in_specs,
            out_specs=out_spec,
            compiler_params=cparams,
            cost_estimate=cost,
        )(x_bf16, w_ih_t, b_gate, w_fc_t_p, b_fc_p)
    else:
        out_padded = pl.pallas_call(
            caption_rnn_kernel_streamed,
            out_shape=out_shape,
            grid=(n_k,),
            in_specs=in_specs,
            out_specs=out_spec,
            scratch_shapes=[pltpu.VMEM((B, 4 * H), jnp.float32)],
            compiler_params=cparams,
            cost_estimate=cost,
        )(x_bf16, w_ih_t, b_gate, w_fc_t_p, b_fc_p)

    return out_padded[:, :V]


# ----------------------------------------------------------------------------
# Params + reference
# ----------------------------------------------------------------------------
def init_params(key, feature_size, hidden_size, vocab_size):
    """Deterministic synthetic parameters (PyTorch-style uniform init)."""
    k1, k2, k3, k4, k5, k6 = jax.random.split(key, 6)
    bound = 1.0 / jnp.sqrt(hidden_size)

    w_ih = jax.random.uniform(k1, (4 * hidden_size, feature_size),
                              jnp.float32, -bound, bound)
    b_ih = jax.random.uniform(k2, (4 * hidden_size,), jnp.float32, -bound, bound)
    b_hh = jax.random.uniform(k3, (4 * hidden_size,), jnp.float32, -bound, bound)
    # W_hh exists in the module but multiplies h0 == 0; drawn for init parity.
    _w_hh = jax.random.uniform(k4, (4 * hidden_size, hidden_size),
                               jnp.float32, -bound, bound)
    w_fc = jax.random.uniform(k5, (vocab_size, hidden_size),
                              jnp.float32, -bound, bound)
    b_fc = jax.random.uniform(k6, (vocab_size,), jnp.float32, -bound, bound)

    w_ih_t = jnp.transpose(w_ih)                          # (F, 4H)
    b_gate = (b_ih + b_hh).reshape(1, 4 * hidden_size)    # (1, 4H)
    w_fc_t = jnp.transpose(w_fc)                          # (H, V)
    b_fc2 = b_fc.reshape(1, vocab_size)                   # (1, V)
    return (w_ih_t, b_gate, w_fc_t, b_fc2)


def reference_forward(features, params):
    """Pure-JAX f32 reference with module semantics, for correctness check."""
    w_ih_t, b_gate, w_fc_t, b_fc = params
    H = w_fc_t.shape[0]
    gates = features @ w_ih_t + b_gate
    i_g = jax.nn.sigmoid(gates[:, 0 * H:1 * H])
    g_g = jnp.tanh(gates[:, 2 * H:3 * H])
    o_g = jax.nn.sigmoid(gates[:, 3 * H:4 * H])
    h_t = o_g * jnp.tanh(i_g * g_g)
    return h_t @ w_fc_t + b_fc


if __name__ == "__main__":
    key = jax.random.PRNGKey(0)
    k_feat, k_param = jax.random.split(key)

    features = jax.random.normal(k_feat, (BATCH, FEATURE_SIZE), jnp.float32)
    captions = jnp.zeros((BATCH, 8), jnp.int32)   # unused, kept for API parity
    params = init_params(k_param, FEATURE_SIZE, HIDDEN_SIZE, VOCAB_SIZE)
    prepped = prepare_params(params)              # one-time weight prep

    # Default path: tk = F (single fused tile at synthetic size).
    out_single = jax.block_until_ready(
        caption_rnn_forward(features, captions, prepped))
    # Streamed path (exercises the K-tiled accumulator structure used at
    # real F = 25088 with tk in {512, 896, 1792, 3584}).
    out_stream = jax.block_until_ready(
        caption_rnn_forward(features, captions, prepped, tk=128))

    ref = reference_forward(features, params)
    assert out_single.shape == (BATCH, VOCAB_SIZE)
    assert out_stream.shape == (BATCH, VOCAB_SIZE)
    # bf16 MXU operands vs f32 reference -> relaxed tolerance.
    assert jnp.allclose(out_single, ref, atol=2e-2, rtol=2e-2), (
        float(jnp.max(jnp.abs(out_single - ref))))
    assert jnp.allclose(out_stream, ref, atol=2e-2, rtol=2e-2), (
        float(jnp.max(jnp.abs(out_stream - ref))))

    print("KERNEL_OK")
</pallas_src>

<mosaic_0001>
module attributes {stable_mosaic.version = 11 : i64} {
  func.func @caption_rnn_kernel_single(%arg0: i32, %arg1: memref<8x256xbf16, #tpu.memory_space<vmem>>, %arg2: memref<256x512xbf16, #tpu.memory_space<vmem>>, %arg3: memref<1x512xf32, #tpu.memory_space<vmem>>, %arg4: memref<128x128xbf16, #tpu.memory_space<vmem>>, %arg5: memref<1x128xf32, #tpu.memory_space<vmem>>, %arg6: memref<8x128xf32, #tpu.memory_space<vmem>>) attributes {dimension_semantics = [#tpu.dimension_semantics<arbitrary>], iteration_bounds = array<i64: 1>, scalar_prefetch = 0 : i64, scratch_operands = 0 : i64, tpu.core_type = #tpu.core_type<tc>, window_params = [{transform_indices = @transform_0, window_bounds = array<i64: 8, 256>}, {transform_indices = @transform_1, window_bounds = array<i64: 256, 512>}, {pipeline_mode = #tpu.pipeline_mode<synchronous>, transform_indices = @transform_2, window_bounds = array<i64: 1, 512>}, {pipeline_mode = #tpu.pipeline_mode<synchronous>, transform_indices = @transform_3, window_bounds = array<i64: 128, 128>}, {pipeline_mode = #tpu.pipeline_mode<synchronous>, transform_indices = @transform_4, window_bounds = array<i64: 1, 128>}, {pipeline_mode = #tpu.pipeline_mode<synchronous>, transform_indices = @transform_5, window_bounds = array<i64: 8, 128>}]} {
    %c0 = arith.constant 0 : index
    %c0_0 = arith.constant 0 : index
    %0 = vector.load %arg1[%c0, %c0_0] : memref<8x256xbf16, #tpu.memory_space<vmem>>, vector<8x256xbf16>
    %c0_1 = arith.constant 0 : index
    %c0_2 = arith.constant 0 : index
    %1 = vector.load %arg2[%c0_1, %c0_2] : memref<256x512xbf16, #tpu.memory_space<vmem>>, vector<256x512xbf16>
    %cst = arith.constant dense<0.000000e+00> : vector<8x512xf32>
    %2 = tpu.matmul %0, %1, %cst {dimension_numbers = #tpu.dot_dimension_numbers<[1], [0], [0], [1], [0, 0, 1, 1], [], []>} : vector<8x256xbf16>, vector<256x512xbf16>, vector<8x512xf32> -> vector<8x512xf32>
    %c0_3 = arith.constant 0 : index
    %c0_4 = arith.constant 0 : index
    %3 = vector.load %arg3[%c0_3, %c0_4] : memref<1x512xf32, #tpu.memory_space<vmem>>, vector<1x512xf32>
    %4 = vector.broadcast %3 : vector<1x512xf32> to vector<8x512xf32>
    %5 = arith.addf %2, %4 : vector<8x512xf32>
    %6 = vector.extract_strided_slice %5 {offsets = [0, 0], sizes = [8, 128], strides = [1, 1]} : vector<8x512xf32> to vector<8x128xf32>
    %7 = arith.negf %6 : vector<8x128xf32>
    %8 = math.exp %7 : vector<8x128xf32>
    %cst_5 = arith.constant 1.000000e+00 : f32
    %9 = vector.broadcast %cst_5 : f32 to vector<8x128xf32>
    %10 = arith.addf %9, %8 : vector<8x128xf32>
    %11 = arith.divf %9, %10 : vector<8x128xf32>
    %12 = vector.extract_strided_slice %5 {offsets = [0, 256], sizes = [8, 128], strides = [1, 1]} : vector<8x512xf32> to vector<8x128xf32>
    %13 = math.tanh %12 : vector<8x128xf32>
    %14 = vector.extract_strided_slice %5 {offsets = [0, 384], sizes = [8, 128], strides = [1, 1]} : vector<8x512xf32> to vector<8x128xf32>
    %15 = arith.negf %14 : vector<8x128xf32>
    %16 = math.exp %15 : vector<8x128xf32>
    %cst_6 = arith.constant 1.000000e+00 : f32
    %17 = vector.broadcast %cst_6 : f32 to vector<8x128xf32>
    %18 = arith.addf %17, %16 : vector<8x128xf32>
    %19 = arith.divf %17, %18 : vector<8x128xf32>
    %20 = arith.mulf %11, %13 : vector<8x128xf32>
    %21 = math.tanh %20 : vector<8x128xf32>
    %22 = arith.mulf %19, %21 : vector<8x128xf32>
    %23 = arith.truncf %22 : vector<8x128xf32> to vector<8x128xbf16>
    %c0_7 = arith.constant 0 : index
    %c0_8 = arith.constant 0 : index
    %24 = vector.load %arg4[%c0_7, %c0_8] : memref<128x128xbf16, #tpu.memory_space<vmem>>, vector<128x128xbf16>
    %cst_9 = arith.constant dense<0.000000e+00> : vector<8x128xf32>
    %25 = tpu.matmul %23, %24, %cst_9 {dimension_numbers = #tpu.dot_dimension_numbers<[1], [0], [0], [1], [0, 0, 1, 1], [], []>} : vector<8x128xbf16>, vector<128x128xbf16>, vector<8x128xf32> -> vector<8x128xf32>
    %c0_10 = arith.constant 0 : index
    %c0_11 = arith.constant 0 : index
    %26 = vector.load %arg5[%c0_10, %c0_11] : memref<1x128xf32, #tpu.memory_space<vmem>>, vector<1x128xf32>
    %27 = vector.broadcast %26 : vector<1x128xf32> to vector<8x128xf32>
    %28 = arith.addf %25, %27 : vector<8x128xf32>
    %c0_12 = arith.constant 0 : index
    %c0_13 = arith.constant 0 : index
    %29 = vector.load %arg6[%c0_12, %c0_13] : memref<8x128xf32, #tpu.memory_space<vmem>>, vector<8x128xf32>
    tpu.vector_store %arg6[%c0_12, %c0_13], %28 {strides = array<i32>} : memref<8x128xf32, #tpu.memory_space<vmem>>, vector<8x128xf32>,
    return
  }
  func.func @transform_0(%arg0: i32) -> (i32, i32) {
    %c0_i32 = arith.constant 0 : i32
    %c0_i32_0 = arith.constant 0 : i32
    return %c0_i32, %arg0 : i32, i32
  }
  func.func @transform_1(%arg0: i32) -> (i32, i32) {
    %c0_i32 = arith.constant 0 : i32
    %c0_i32_0 = arith.constant 0 : i32
    return %arg0, %c0_i32 : i32, i32
  }
  func.func @transform_2(%arg0: i32) -> (i32, i32) {
    %c0_i32 = arith.constant 0 : i32
    %c0_i32_0 = arith.constant 0 : i32
    %c0_i32_1 = arith.constant 0 : i32
    return %c0_i32, %c0_i32_0 : i32, i32
  }
  func.func @transform_3(%arg0: i32) -> (i32, i32) {
    %c0_i32 = arith.constant 0 : i32
    %c0_i32_0 = arith.constant 0 : i32
    %c0_i32_1 = arith.constant 0 : i32
    return %c0_i32, %c0_i32_0 : i32, i32
  }
  func.func @transform_4(%arg0: i32) -> (i32, i32) {
    %c0_i32 = arith.constant 0 : i32
    %c0_i32_0 = arith.constant 0 : i32
    %c0_i32_1 = arith.constant 0 : i32
    return %c0_i32, %c0_i32_0 : i32, i32
  }
  func.func @transform_5(%arg0: i32) -> (i32, i32) {
    %c0_i32 = arith.constant 0 : i32
    %c0_i32_0 = arith.constant 0 : i32
    %c0_i32_1 = arith.constant 0 : i32
    return %c0_i32, %c0_i32_0 : i32, i32
  }
}

</mosaic_0001>

<bundles_post_ra>
// kernel: tpu_custom_call.1
= control target key start
LH: loop header
LB: loop body
LE: loop exit
PB: predicated region body
PF: predicated region fallthrough
CT: control target
= control target key end

     0   :  { %10 = vsyncpa [#allocation3], 0  ;;  %s1118_s0 = inlined_call_operand.hbm [shape: bf16[8,256], index: 0, kind: input, shape index: {}]   ;;  %s1119_s1 = inlined_call_operand.hbm [shape: bf16[256,512], index: 1, kind: input, shape index: {}]   ;;  %s1120_s2 = inlined_call_operand.vmem [shape: f32[1,512], index: 2, kind: input, shape index: {}]   ;;  %s1121_s3 = inlined_call_operand.hbm [shape: bf16[128,128], index: 3, kind: input, shape index: {}]   ;;  %s1122_s4 = inlined_call_operand.vmem [shape: f32[1,128], index: 4, kind: input, shape index: {}]   ;;  %s1123_s5 = inlined_call_operand.hbm [shape: f32[8,128], index: 5, kind: output, shape index: {}]  }
   0x1   :  { %11 = vsyncpa [#allocation6], 0 }
   0x2   :  { %12 = vsyncpa [#allocation4], 0  ;;  %s1024_s18 = smov [#allocation5]   ;;  %s930_s22 = scalar_lea.hbm %s1119_s1, 8192 }
   0x3   :  { %s28_s19 = sshll.u32 %s1024_s18, 4  ;;  %p931_p0 = scmp.ne.s32.totalorder %s1119_s1, %s930_s22  ;;  %s29_s19 = int_to_ptr.vmem [resolvable:$true] %s28_s19 }
   0x4   :  { %p934_p1 = scmp.lt.u32.totalorder %s930_s22, %s1119_s1 }
   0x6   :  { %p936_p2 = pnand %p934_p1, %p931_p0 }
   0x8   :  { %939 = shalt.err (!%p936_p2)
}
   0x9   :  { %s940_s27 = scalar_lea.vmem %s29_s19, 8192  ;;  %p945_p4 = scmp.lt.s32.totalorder %s29_s19, %s29_s19 }
   0xa   :  { %p941_p3 = scmp.ne.s32.totalorder %s29_s19, %s940_s27  ;;  %p946_p5 = scmp.lt.s32.totalorder %s940_s27, %s940_s27 }
   0xc   :  { %p947_p6 = por %p946_p5, %p945_p4 }
   0xe   :  { %p948_p7 = pnand %p947_p6, %p941_p3 }
  0x10   :  { %951 = shalt.err (!%p948_p7)
}
  0x11   :  { %s1025_s28 = smov 256   ;;  %s1026_s29 = smov 16  }
  0x12   :  { %34 = dma.hbm_to_vmem [thread:$0]  %s1119_s1, 8192, %s29_s19, [#allocation6], %s1025_s28, %s1025_s28, %s1026_s29  }
  0x13   :  { %s1027_s7 = smov [#allocation2]   ;;  %s1028_s9 = smov [#allocation7]  }
  0x14   :  { %s19_s8 = sshll.u32 %s1027_s7, 4  ;;  %s42_s10 = sshll.u32 %s1028_s9, 4  ;;  %s20_s8 = int_to_ptr.vmem [resolvable:$true] %s19_s8  ;;  %s43_s10 = int_to_ptr.vmem [resolvable:$true] %s42_s10 }
  0x15   :  { %s952_s13 = scalar_lea.hbm %s1118_s0, 128 }
  0x16   :  { %p953_p8 = scmp.ne.s32.totalorder %s1118_s0, %s952_s13  ;;  %p956_p9 = scmp.lt.u32.totalorder %s952_s13, %s1118_s0 }
  0x18   :  { %p958_p10 = pnand %p956_p9, %p953_p8 }
  0x1a   :  { %961 = shalt.err (!%p958_p10)
}
  0x1b   :  { %s962_s1 = scalar_lea.vmem %s20_s8, 128  ;;  %p967_p12 = scmp.lt.s32.totalorder %s20_s8, %s20_s8 }
  0x1c   :  { %p963_p11 = scmp.ne.s32.totalorder %s20_s8, %s962_s1  ;;  %p968_p13 = scmp.lt.s32.totalorder %s962_s1, %s962_s1 }
  0x1e   :  { %p969_p0 = por %p968_p13, %p967_p12 }
  0x20   :  { %p970_p1 = pnand %p969_p0, %p963_p11 }
  0x22   :  { %973 = shalt.err (!%p970_p1)
}
  0x23   :  { %22 = dma.hbm_to_vmem [thread:$0]  %s1118_s0, 128, %s20_s8, [#allocation3]  }
  0x24   :  { %s974_s22 = scalar_lea.hbm %s1121_s3, 1024 }
  0x25   :  { %p975_p2 = scmp.ne.s32.totalorder %s1121_s3, %s974_s22  ;;  %p978_p3 = scmp.lt.u32.totalorder %s974_s22, %s1121_s3 }
  0x27   :  { %p980_p4 = pnand %p978_p3, %p975_p2 }
  0x29   :  { %983 = shalt.err (!%p980_p4)
}
  0x2a   :  { %s984_s27 = scalar_lea.vmem %s43_s10, 1024  ;;  %p989_p6 = scmp.lt.s32.totalorder %s43_s10, %s43_s10 }
  0x2b   :  { %p985_p5 = scmp.ne.s32.totalorder %s43_s10, %s984_s27  ;;  %p990_p7 = scmp.lt.s32.totalorder %s984_s27, %s984_s27 }
  0x2d   :  { %p991_p8 = por %p990_p7, %p989_p6 }
  0x2f   :  { %p992_p9 = pnand %p991_p8, %p985_p5 }
  0x31   :  { %995 = shalt.err (!%p992_p9)
}
  0x32   :  { %s1029_s0 = smov 64   ;;  %s1030_s28 = smov 4  }
  0x33   :  { %48 = dma.hbm_to_vmem [thread:$0]  %s1121_s3, 1024, %s43_s10, [#allocation6], %s1029_s0, %s1029_s0, %s1030_s28  }
  0x34   :  { %1018 = dma.done.wait [#allocation3], 128  }
  0x35   :  { %1019 = vsyncadd [#allocation3], 4294967168 }
  0x36   :  { %1020 = dma.done.wait [#allocation6], 9216  }
  0x37   :  { %1021 = vsyncadd [#allocation6], 4294958080  ;;  %v812_v0 = vld [vmem:[#allocation5 + $0x4] ss:$16 sps:$4 sm:$0xff]   ;;  %v814_v1 = vld [vmem:[#allocation5] ss:$16 sps:$4 sm:$0xff]  }
  0x38   :  { %470 = vmatprep.subr.bf16.mxu0 %v812_v0  ;;  %v815_v2 = vld [vmem:[#allocation5 + $0x24] ss:$16 sps:$4 sm:$0xff]   ;;  %v817_v3 = vld [vmem:[#allocation5 + $0x20] ss:$16 sps:$4 sm:$0xff]   ;;  %v821_v5 = vld [vmem:[#allocation5 + $0xc] ss:$16 sps:$4 sm:$0xff]  }
  0x39   :  { %471 = vmatpush1.bf16.msra.mxu0 %v814_v1  ;;  %v818_v4 = vld [vmem:[#allocation5 + $0x44] ss:$16 sps:$4 sm:$0xff]   ;;  %v823_v6 = vld [vmem:[#allocation5 + $0x8] ss:$16 sps:$4 sm:$0xff]   ;;  %v820_v7 = vld [vmem:[#allocation5 + $0x40] ss:$16 sps:$4 sm:$0xff]   ;;  %510 = vmatprep.subr.bf16.mxu1 %v821_v5 }
  0x3a   :  { %472 = vmatprep.subr.bf16.mxu0 %v815_v2  ;;  %511 = vmatpush1.bf16.msra.mxu1 %v823_v6  ;;  %v827_v8 = vld [vmem:[#allocation5 + $0x2c] ss:$16 sps:$4 sm:$0xff]   ;;  %v829_v9 = vld [vmem:[#allocation5 + $0x28] ss:$16 sps:$4 sm:$0xff]   ;;  %v824_v10 = vld [vmem:[#allocation5 + $0x64] ss:$16 sps:$4 sm:$0xff]  }
  0x3b   :  { %512 = vmatprep.subr.bf16.mxu1 %v827_v8  ;;  %v826_v11 = vld [vmem:[#allocation5 + $0x60] ss:$16 sps:$4 sm:$0xff]   ;;  %v833_v12 = vld [vmem:[#allocation5 + $0x4c] ss:$16 sps:$4 sm:$0xff]   ;;  %v830_v13 = vld [vmem:[#allocation5 + $0x84] ss:$16 sps:$4 sm:$0xff]  }
  0x3c   :  { %v835_v14 = vld [vmem:[#allocation5 + $0x48] ss:$16 sps:$4 sm:$0xff]   ;;  %v839_v15 = vld [vmem:[#allocation5 + $0x6c] ss:$16 sps:$4 sm:$0xff]   ;;  %v832_v16 = vld [vmem:[#allocation5 + $0x80] ss:$16 sps:$4 sm:$0xff]  }
  0x3d   :  { %473 = vmatpush1.bf16.msra.mxu0 %v817_v3  ;;  %v836_v17 = vld [vmem:[#allocation5 + $0xa4] ss:$16 sps:$4 sm:$0xff]   ;;  %v841_v18 = vld [vmem:[#allocation5 + $0x68] ss:$16 sps:$4 sm:$0xff]   ;;  %v845_v19 = vld [vmem:[#allocation5 + $0x8c] ss:$16 sps:$4 sm:$0xff]  }
  0x3e   :  { %474 = vmatprep.subr.bf16.mxu0 %v818_v4  ;;  %513 = vmatpush1.bf16.msra.mxu1 %v829_v9  ;;  %v838_v20 = vld [vmem:[#allocation5 + $0xa0] ss:$16 sps:$4 sm:$0xff]   ;;  %v842_v21 = vld [vmem:[#allocation5 + $0xc4] ss:$16 sps:$4 sm:$0xff]   ;;  %v847_v22 = vld [vmem:[#allocation5 + $0x88] ss:$16 sps:$4 sm:$0xff]  }
  0x3f   :  { %514 = vmatprep.subr.bf16.mxu1 %v833_v12  ;;  %v851_v23 = vld [vmem:[#allocation5 + $0xac] ss:$16 sps:$4 sm:$0xff]   ;;  %v844_v24 = vld [vmem:[#allocation5 + $0xc0] ss:$16 sps:$4 sm:$0xff]   ;;  %v848_v25 = vld [vmem:[#allocation5 + $0xe4] ss:$16 sps:$4 sm:$0xff]   ;;  %v128_v12 = vlaneseq }
  0x40   :  { %v853_v26 = vld [vmem:[#allocation5 + $0xa8] ss:$16 sps:$4 sm:$0xff]   ;;  %v857_v27 = vld [vmem:[#allocation5 + $0xcc] ss:$16 sps:$4 sm:$0xff]   ;;  %v850_v28 = vld [vmem:[#allocation5 + $0xe0] ss:$16 sps:$4 sm:$0xff]  }
  0x41   :  { %475 = vmatpush1.bf16.msra.mxu0 %v820_v7  ;;  %v854_v29 = vld [vmem:[#allocation5 + $0x104] ss:$16 sps:$4 sm:$0xff]   ;;  %v859_v30 = vld [vmem:[#allocation5 + $0xc8] ss:$16 sps:$4 sm:$0xff]   ;;  %v863_v31 = vld [vmem:[#allocation5 + $0xec] ss:$16 sps:$4 sm:$0xff]  }
  0x42   :  { %476 = vmatprep.subr.bf16.mxu0 %v824_v10  ;;  %515 = vmatpush1.bf16.msra.mxu1 %v835_v14  ;;  %v856_v32 = vld [vmem:[#allocation5 + $0x100] ss:$16 sps:$4 sm:$0xff]   ;;  %v860_v33 = vld [vmem:[#allocation5 + $0x124] ss:$16 sps:$4 sm:$0xff]   ;;  %v865_v34 = vld [vmem:[#allocation5 + $0xe8] ss:$16 sps:$4 sm:$0xff]  }
  0x43   :  { %516 = vmatprep.subr.bf16.mxu1 %v839_v15  ;;  %v869_v35 = vld [vmem:[#allocation5 + $0x10c] ss:$16 sps:$4 sm:$0xff]   ;;  %v862_v36 = vld [vmem:[#allocation5 + $0x120] ss:$16 sps:$4 sm:$0xff]   ;;  %v866_v37 = vld [vmem:[#allocation5 + $0x144] ss:$16 sps:$4 sm:$0xff]  }
  0x44   :  { %v871_v38 = vld [vmem:[#allocation5 + $0x108] ss:$16 sps:$4 sm:$0xff]   ;;  %v875_v39 = vld [vmem:[#allocation5 + $0x12c] ss:$16 sps:$4 sm:$0xff]   ;;  %v868_v40 = vld [vmem:[#allocation5 + $0x140] ss:$16 sps:$4 sm:$0xff]  }
  0x45   :  { %477 = vmatpush1.bf16.msra.mxu0 %v826_v11  ;;  %v872_v41 = vld [vmem:[#allocation5 + $0x164] ss:$16 sps:$4 sm:$0xff]   ;;  %v877_v42 = vld [vmem:[#allocation5 + $0x128] ss:$16 sps:$4 sm:$0xff]   ;;  %v881_v43 = vld [vmem:[#allocation5 + $0x14c] ss:$16 sps:$4 sm:$0xff]  }
  0x46   :  { %478 = vmatprep.subr.bf16.mxu0 %v830_v13  ;;  %517 = vmatpush1.bf16.msra.mxu1 %v841_v18  ;;  %v61_v44 = vld [vmem:[#allocation2] sm:$0xff]  ;;  %v874_v45 = vld [vmem:[#allocation5 + $0x160] ss:$16 sps:$4 sm:$0xff]   ;;  %v878_v47 = vld [vmem:[#allocation5 + $0x184] ss:$16 sps:$4 sm:$0xff]   ;;  %v1031_v4 = vmov 0.0  }
  0x47   :  { %518 = vmatprep.subr.bf16.mxu1 %v845_v19  ;;  %v697_v46 = vcombine.high %v61_v44, %v61_v44  ;;  %v883_v48 = vld [vmem:[#allocation5 + $0x148] ss:$16 sps:$4 sm:$0xff]   ;;  %v887_v49 = vld [vmem:[#allocation5 + $0x16c] ss:$16 sps:$4 sm:$0xff]   ;;  %v880_v50 = vld [vmem:[#allocation5 + $0x180] ss:$16 sps:$4 sm:$0xff]   ;;  %v696_v1 = vcombine.low %v61_v44, %v61_v44 }
  0x48   :  { %v889_v51 = vld [vmem:[#allocation5 + $0x168] ss:$16 sps:$4 sm:$0xff]   ;;  %v884_v52 = vld [vmem:[#allocation5 + $0x1a4] ss:$16 sps:$4 sm:$0xff]   ;;  %v893_v53 = vld [vmem:[#allocation5 + $0x18c] ss:$16 sps:$4 sm:$0xff]  }
  0x49   :  { %479 = vmatpush1.bf16.msra.mxu0 %v832_v16  ;;  %502 = vmatprep.mubr.bf16.mxu0 %v697_v46  ;;  %v886_v54 = vld [vmem:[#allocation5 + $0x1a0] ss:$16 sps:$4 sm:$0xff]   ;;  %v895_v55 = vld [vmem:[#allocation5 + $0x188] ss:$16 sps:$4 sm:$0xff]   ;;  %v890_v56 = vld [vmem:[#allocation5 + $0x1c4] ss:$16 sps:$4 sm:$0xff]  }
  0x4a   :  { %480 = vmatprep.subr.bf16.mxu0 %v836_v17  ;;  %519 = vmatpush1.bf16.msra.mxu1 %v847_v22  ;;  %v899_v57 = vld [vmem:[#allocation5 + $0x1ac] ss:$16 sps:$4 sm:$0xff]   ;;  %v892_v58 = vld [vmem:[#allocation5 + $0x1c0] ss:$16 sps:$4 sm:$0xff]   ;;  %v901_v59 = vld [vmem:[#allocation5 + $0x1a8] ss:$16 sps:$4 sm:$0xff]  }
  0x4b   :  { %520 = vmatprep.subr.bf16.mxu1 %v851_v23  ;;  %542 = vmatprep.mubr.bf16.mxu1 %v697_v46  ;;  %v896_v60 = vld [vmem:[#allocation5 + $0x1e4] ss:$16 sps:$4 sm:$0xff]   ;;  %v904_v61 = vld [vmem:[#allocation5 + $0x1cc] ss:$16 sps:$4 sm:$0xff]   ;;  %v898_v62 = vld [vmem:[#allocation5 + $0x1e0] ss:$16 sps:$4 sm:$0xff]  }
  0x4c   :  { %v906_v63 = vld [vmem:[#allocation5 + $0x1c8] ss:$16 sps:$4 sm:$0xff]   ;;  %v907_v0 = vld [vmem:[#allocation5 + $0x1ec] ss:$16 sps:$4 sm:$0xff]   ;;  %v910_v3 = vld [vmem:[#allocation7] sm:$0xff]   ;;  %vm1032_vm0 = vmmov 0  }
  0x4d   :  { %481 = vmatpush1.bf16.msra.mxu0 %v838_v20  ;;  %v909_v2 = vld [vmem:[#allocation5 + $0x1e8] ss:$16 sps:$4 sm:$0xff]   ;;  %v912_v6 = vld [vmem:[#allocation7 + $0x10] sm:$0xff]   ;;  %v914_v8 = vld [vmem:[#allocation7 + $0x20] sm:$0xff]   ;;  %v129_v13 = vshrl.u32 %v128_v12, 7  ;;  %s1033_s8 = smov [#allocation8]  }
  0x4e   :  { %482 = vmatprep.subr.bf16.mxu0 %v842_v21  ;;  %521 = vmatpush1.bf16.msra.mxu1 %v853_v26  ;;  %v911_v5 = vld [vmem:[#allocation7 + $0x8] sm:$0xff]   ;;  %v913_v7 = vld [vmem:[#allocation7 + $0x18] sm:$0xff]   ;;  %v916_v10 = vld [vmem:[#allocation7 + $0x30] sm:$0xff]   ;;  %s686_s9 = sshll.u32 %s1033_s8, 4  ;;  %s687_s9 = int_to_ptr.vmem [resolvable:$true] %s686_s9 }
  0x4f   :  { %522 = vmatprep.subr.bf16.mxu1 %v857_v27  ;;  %v915_v9 = vld [vmem:[#allocation7 + $0x28] sm:$0xff]   ;;  %v917_v11 = vld [vmem:[#allocation7 + $0x38] sm:$0xff]   ;;  %v130_v14 = vsub.s32 0, %v129_v13  ;;  %v138_v17 = vsub.s32 3, %v129_v13  ;;  %v134_v26 = vsub.s32 2, %v129_v13  ;;  %s996_s10 = scalar_lea.vmem %s687_s9, 128  ;;  %p1001_p11 = scmp.lt.s32.totalorder %s687_s9, %s687_s9 }
  0x50   :  { %v126_v15 = vld [vmem:[%s1120_s2] sm:$0xf]  ;;  %p997_p10 = scmp.ne.s32.totalorder %s687_s9, %s996_s10  ;;  %p1002_p12 = scmp.lt.s32.totalorder %s996_s10, %s996_s10 }
  0x51   :  { %483 = vmatpush1.bf16.msra.mxu0 %v844_v24  ;;  %v131_v16 = vrot.slane %v126_v15, %v130_v14  ;;  %v139_v22 = vrot.slane %v126_v15, %v138_v17 }
  0x52   :  { %484 = vmatprep.subr.bf16.mxu0 %v848_v25  ;;  %523 = vmatpush1.bf16.msra.mxu1 %v859_v30  ;;  %p1003_p13 = por %p1002_p12, %p1001_p11 }
  0x53   :  { %524 = vmatprep.subr.bf16.mxu1 %v863_v31 }
  0x54   :  { %p1004_p0 = pnand %p1003_p13, %p997_p10 }
  0x55   :  { %485 = vmatpush1.bf16.msra.mxu0 %v850_v28 }
  0x56   :  { %486 = vmatprep.subr.bf16.mxu0 %v854_v29  ;;  %525 = vmatpush1.bf16.msra.mxu1 %v865_v34 }
  0x57   :  { %526 = vmatprep.subr.bf16.mxu1 %v869_v35 }
  0x59   :  { %487 = vmatpush1.bf16.msra.mxu0 %v856_v32  ;;  %v135_v32 = vrot.slane %v126_v15, %v134_v26 }
  0x5a   :  { %488 = vmatprep.subr.bf16.mxu0 %v860_v33  ;;  %527 = vmatpush1.bf16.msra.mxu1 %v871_v38 }
  0x5b   :  { %528 = vmatprep.subr.bf16.mxu1 %v875_v39 }
  0x5d   :  { %489 = vmatpush1.bf16.msra.mxu0 %v862_v36 }
  0x5e   :  { %490 = vmatprep.subr.bf16.mxu0 %v866_v37  ;;  %529 = vmatpush1.bf16.msra.mxu1 %v877_v42 }
  0x5f   :  { %530 = vmatprep.subr.bf16.mxu1 %v881_v43 }
  0x61   :  { %491 = vmatpush1.bf16.msra.mxu0 %v868_v40 }
  0x62   :  { %492 = vmatprep.subr.bf16.mxu0 %v872_v41  ;;  %531 = vmatpush1.bf16.msra.mxu1 %v883_v48 }
  0x63   :  { %532 = vmatprep.subr.bf16.mxu1 %v887_v49 }
  0x65   :  { %493 = vmatpush1.bf16.msra.mxu0 %v874_v45  ;;  %v764_v45 = vld [vmem:[%s1122_s4] ss:$0 sm:$0xff] }
  0x66   :  { %494 = vmatprep.subr.bf16.mxu0 %v878_v47  ;;  %533 = vmatpush1.bf16.msra.mxu1 %v889_v51 }
  0x67   :  { %534 = vmatprep.subr.bf16.mxu1 %v893_v53 }
  0x69   :  { %495 = vmatpush1.bf16.msra.mxu0 %v880_v50 }
  0x6a   :  { %496 = vmatprep.subr.bf16.mxu0 %v884_v52  ;;  %535 = vmatpush1.bf16.msra.mxu1 %v895_v55 }
  0x6b   :  { %536 = vmatprep.subr.bf16.mxu1 %v899_v57 }
  0x6d   :  { %497 = vmatpush1.bf16.msra.mxu0 %v886_v54 }
  0x6e   :  { %498 = vmatprep.subr.bf16.mxu0 %v890_v56  ;;  %537 = vmatpush1.bf16.msra.mxu1 %v901_v59 }
  0x6f   :  { %538 = vmatprep.subr.bf16.mxu1 %v904_v61 }
  0x71   :  { %499 = vmatpush1.bf16.msra.mxu0 %v892_v58 }
  0x72   :  { %500 = vmatprep.subr.bf16.mxu0 %v896_v60  ;;  %539 = vmatpush1.bf16.msra.mxu1 %v906_v63 }
  0x73   :  { %540 = vmatprep.subr.bf16.mxu1 %v907_v0 }
  0x75   :  { %501 = vmatpush1.bf16.msra.mxu0 %v898_v62 }
  0x76   :  { %541 = vmatpush1.bf16.msra.mxu1 %v909_v2  ;;  %782 = vmatprep.subr.bf16.mxu0 %v1031_v4 }
  0x78   :  { %503 = vmatmul.mubr.bf16.vlgmr.msra.gmra.mrb[0].mxu0 %v696_v1 }
  0x79   :  { %543 = vmatmul.mubr.bf16.vlgmr.msra.gmra.mrb[0].mxu1 %v696_v1  ;;  %783 = vmatpush3.bf16.msra.mxu0 %v910_v3 }
  0x7a   :  { %784 = vmatprep.subr.bf16.mxu0 %v1031_v4  ;;  %798 = vmatprep.mubr.msk.bf16.mxu0 %vm1032_vm0, %v1031_v4 }
  0x7d   :  { %785 = vmatpush3.bf16.msra.mxu0 %v911_v5 }
  0x7e   :  { %786 = vmatprep.subr.bf16.mxu0 %v1031_v4 }
  0x81   :  { %787 = vmatpush3.bf16.msra.mxu0 %v912_v6 }
  0x82   :  { %788 = vmatprep.subr.bf16.mxu0 %v1031_v4 }
  0x85   :  { %789 = vmatpush3.bf16.msra.mxu0 %v913_v7 }
  0x86   :  { %790 = vmatprep.subr.bf16.mxu0 %v1031_v4 }
  0x89   :  { %791 = vmatpush3.bf16.msra.mxu0 %v914_v8 }
  0x8a   :  { %792 = vmatprep.subr.bf16.mxu0 %v1031_v4 }
  0x8d   :  { %793 = vmatpush3.bf16.msra.mxu0 %v915_v9 }
  0x8e   :  { %794 = vmatprep.subr.bf16.mxu0 %v1031_v4 }
  0x91   :  { %795 = vmatpush3.bf16.msra.mxu0 %v916_v10 }
  0x92   :  { %796 = vmatprep.subr.bf16.mxu0 %v1031_v4 }
  0x95   :  { %797 = vmatpush3.bf16.msra.mxu0 %v917_v11 }
 0x14b   :  { %v504_v18 = vpop.f32.mrb[0].mxu0 }
 0x14c   :  { %v505_v19 = vadd.f32 %v504_v18, %v131_v16  ;;  %v506_v20 = vpop.f32.mrb[1].mxu0  ;;  %v544_v25 = vpop.f32.mrb[0].mxu1 }
 0x14d   :  { %v507_v21 = vpop.f32.mrb[2].mxu0  ;;  %v546_v27 = vpop.f32.mrb[1].mxu1  ;;  %v545_v33 = vadd.f32 %v544_v25, %v135_v32 }
 0x14e   :  { %v762_v23 = vmul.f32 -1.442695, %v505_v19  ;;  %v508_v24 = vpop.f32.mrb[3].mxu0  ;;  %v547_v28 = vadd.f32 %v546_v27, %v139_v22  ;;  %v548_v29 = vpop.f32.mrb[2].mxu1 }
 0x14f   :  { %v549_v30 = vpop.f32.mrb[3].mxu1 }
 0x150   :  { %918 = vpow2.f32 %v762_v23  ;;  %v763_v31 = vmul.f32 -1.442695, %v547_v28 }
 0x152   :  { %920 = vpow2.f32 %v763_v31 }
 0x153   :  { %922 = vtanh.f32 %v545_v33 }
 0x15a   :  { %v919_v34 = vpop.eup %918 }
 0x15b   :  { %v554_v35 = vadd.f32 1.0, %v919_v34 }
 0x15c   :  { %v921_v36 = vpop.eup %920 }
 0x15d   :  { %924 = vrcp.f32 %v554_v35  ;;  %v561_v37 = vadd.f32 1.0, %v921_v36  ;;  %v923_v38 = vpop.eup %922 }
 0x15f   :  { %926 = vrcp.f32 %v561_v37 }
 0x167   :  { %v925_v39 = vpop.eup %924 }
 0x168   :  { %v564_v40 = vmul.f32 %v925_v39, %v923_v38 }
 0x169   :  { %v927_v41 = vpop.eup %926 }
 0x16a   :  { %928 = vtanh.f32 %v564_v40 }
 0x174   :  { %v929_v42 = vpop.eup %928 }
 0x175   :  { %v566_v43 = vmul.f32 %v929_v42, %v927_v41 }
 0x177   :  { %v567_v44 = vpack.c.bf16 %v566_v43, %v566_v43 }
 0x179   :  { %799 = vmatmul.mubr.bf16.vlgmr.msra.gmra.mrb[4].mxu0 %v567_v44 }
 0x24c   :  { %v673_v46 = vpop.f32.mrb[4].mxu0 }
 0x24d   :  { %v674_v47 = vadd.f32 %v764_v45, %v673_v46  ;;  %v800_v48 = vpop.f32.mrb[5].mxu0 }
 0x24e   :  { %v676_v49 = vpop.f32.mrb[6].mxu0 }
 0x24f   :  { %679 = vst [vmem:[#allocation8] sm:$0xff] %v674_v47  ;;  %v801_v50 = vpop.f32.mrb[7].mxu0 }
 0x250   :  { %1007 = shalt.err (!%p1004_p0)
}
 0x251   :  { %s1008_s4 = scalar_lea.hbm %s1123_s5, 128 }
 0x252   :  { %p1009_p1 = scmp.ne.s32.totalorder %s1123_s5, %s1008_s4  ;;  %p1012_p2 = scmp.lt.u32.totalorder %s1008_s4, %s1123_s5 }
 0x254   :  { %p1014_p3 = pnand %p1012_p2, %p1009_p1 }
 0x256   :  { %1017 = shalt.err (!%p1014_p3)
}
 0x257   :  { %689 = dma.vmem_to_hbm [thread:$0]  %s687_s9, 128, %s1123_s5, [#allocation4]  }
 0x258   :  { %1022 = dma.done.wait [#allocation4], 128  }
 0x259   :  { %1023 = vsyncadd [#allocation4], 4294967168 }
 0x25a   :  { %693 = vsyncpa [#allocation3], 1 }
 0x25b   :  { %694 = vsyncpa [#allocation6], 1 }
 0x25c   :  { %695 = vsyncpa [#allocation4], 1 }

</bundles_post_ra>
